<compile_context>
chip_gen: v7x
topology: tpu7x:2x2x1
jax: 0.10.0
libtpu: 0.0.40
codegen_flags: <defaults>
</compile_context>

<pallas_src>
import functools

import jax
import jax.numpy as jnp
import numpy as np
from jax.experimental import pallas as pl
from jax.experimental.pallas import tpu as pltpu

VMEM_SPEC = pl.BlockSpec(memory_space=pltpu.MemorySpace.VMEM)


# ---------------------------------------------------------------------------
# Fused STConv kernel (transposed layout: channels on sublanes, nodes on lanes)
# ---------------------------------------------------------------------------
def _stconv_kernel(g_in_ref, wf_in_ref, w_in_ref, b_in_ref,
                   g_out_ref, wf_out_ref, w_out_ref, b_out_ref,
                   x_lanes_ref, a_hat_t_ref, wg_in_ref, wg_out_ref, bg_ref,
                   x_nodes_ref, wr_ref, br_ref, o_ref, *, B, Cin, Cout):
    f32 = jnp.float32

    # ---- Stage 1: the two MultiGraphConv branches -------------------------
    # MultiGraphConv: m = ((graph * wf).sum(0)) @ w ; here everything is
    # pre-transposed in the wrapper, so m^T = w^T @ ((graph^T * wf^T).sum(0)).
    a_in_t = jnp.sum(g_in_ref[...] * wf_in_ref[...], axis=0)            # (N, N)
    a_out_t = jnp.sum(g_out_ref[...] * wf_out_ref[...], axis=0)         # (N, N)
    m_in_t = jnp.dot(w_in_ref[...], a_in_t, preferred_element_type=f32)
    m_out_t = jnp.dot(w_out_ref[...], a_out_t, preferred_element_type=f32)

    # One MXU op per branch over the whole batch (rows are (b, c) pairs).
    x_lanes = x_lanes_ref[...]                                           # (B*Cin, N)
    s_in = jnp.maximum(
        jnp.dot(x_lanes, m_in_t, preferred_element_type=f32) + b_in_ref[...], 0.0)
    s_out = jnp.maximum(
        jnp.dot(x_lanes, m_out_t, preferred_element_type=f32) + b_out_ref[...], 0.0)

    # Epilogue reorder: (B*Cin, N) -> (Cin, B*N).  Static B-way split + lane
    # concat so the flattened node index b*N+n sits on the lane axis for the
    # GCN contraction (no per-batch matmul loop, no concat into the output).
    y_in_t = jnp.concatenate(
        [s_in[b * Cin:(b + 1) * Cin, :] for b in range(B)], axis=1)      # (Cin, M)
    y_out_t = jnp.concatenate(
        [s_out[b * Cin:(b + 1) * Cin, :] for b in range(B)], axis=1)     # (Cin, M)

    # ---- Stage 2: GCNConv (dense A_hat applied ONCE) + GLU + residual -----
    a_hat_t = a_hat_t_ref[...]                                           # (M, M)
    t_in = jnp.dot(y_in_t, a_hat_t, preferred_element_type=f32)          # (Cin, M)
    t_out = jnp.dot(y_out_t, a_hat_t, preferred_element_type=f32)        # (Cin, M)

    # h^T = W^T @ t^T + b  (GLU value half on rows [:Cout], gate on [Cout:]).
    h = (jnp.dot(wg_in_ref[...], t_in, preferred_element_type=f32)
         + jnp.dot(wg_out_ref[...], t_out, preferred_element_type=f32)
         + bg_ref[...])                                                  # (2*Cout, M)
    glu = h[:Cout, :] * jax.nn.sigmoid(h[Cout:, :])                      # (Cout, M)

    # Residual branch (downsample=True): relu(Linear(x)).
    res = jnp.maximum(
        jnp.dot(wr_ref[...], x_nodes_ref[...], preferred_element_type=f32)
        + br_ref[...], 0.0)                                              # (Cout, M)

    o_ref[...] = glu + res                                               # lanes = M


# ---------------------------------------------------------------------------
# Glue: GCN normalized adjacency (transposed) from edge_index.
# TODO(synk): the scatter over edge_index has no clean in-kernel Pallas form;
# it stays in plain-JAX glue and the kernel consumes the dense matrix.
# ---------------------------------------------------------------------------
def build_gcn_adj_t(edge_index, num_nodes):
    row, col = edge_index[0], edge_index[1]
    loop = jnp.arange(num_nodes)
    row = jnp.concatenate([row, loop])
    col = jnp.concatenate([col, loop])
    w = jnp.ones(row.shape[0], dtype=jnp.float32)
    deg = jnp.zeros(num_nodes, jnp.float32).at[col].add(w)
    dinv = jnp.where(deg > 0, 1.0 / jnp.sqrt(deg), 0.0)
    norm = dinv[row] * dinv[col]
    # Transposed adjacency A_hat^T[source, target] so the kernel can compute
    # t^T = x2^T @ A_hat^T with nodes on the lane axis.
    return jnp.zeros((num_nodes, num_nodes), jnp.float32).at[row, col].add(norm)


# ---------------------------------------------------------------------------
# Wrapper: layout prep (all cheap XLA glue) + the single fused pallas_call.
# ---------------------------------------------------------------------------
def stconv_forward(x, graph_in, graph_out, edge_index, p):
    B, N, Cin = x.shape
    G = graph_in.shape[0]
    Cout = p["w_res"].shape[1]
    M = B * N

    a_hat_t = build_gcn_adj_t(edge_index, M)                  # (M, M)

    # Pre-transposed operands so the kernel never transposes in-VMEM.
    g_in_t = jnp.swapaxes(graph_in, -1, -2)
    g_out_t = jnp.swapaxes(graph_out, -1, -2)
    wf_in_t = jnp.swapaxes(p["wf_in"], -1, -2)
    wf_out_t = jnp.swapaxes(p["wf_out"], -1, -2)
    w_in_t = p["w_in"].T
    w_out_t = p["w_out"].T
    x_lanes = x.transpose(0, 2, 1).reshape(B * Cin, N)        # rows (b,c), lanes n
    x_nodes_t = x.transpose(2, 0, 1).reshape(Cin, M)          # rows c, lanes b*N+n
    b_in_rows = jnp.tile(p["b_in"].reshape(Cin, 1), (B, 1))   # (B*Cin, 1)
    b_out_rows = jnp.tile(p["b_out"].reshape(Cin, 1), (B, 1))
    wg_in_t = p["wg"][:Cin, :].T                              # (2*Cout, Cin)
    wg_out_t = p["wg"][Cin:, :].T                             # (2*Cout, Cin)
    bg_col = p["bg"].reshape(2 * Cout, 1)
    wr_t = p["w_res"].T                                       # (Cout, Cin)
    br_col = p["b_res"].reshape(Cout, 1)

    cost = pl.CostEstimate(
        flops=int(4 * G * N * N + 4 * N * N * N + 4 * B * Cin * N * N
                  + 4 * Cin * M * M + 8 * Cout * Cin * M + 2 * Cout * Cin * M
                  + 8 * Cout * M + 2 * B * Cin * N),
        transcendentals=int(Cout * M),
        bytes_accessed=int(4 * (4 * G * N * N + 2 * N * N + 2 * B * Cin
                                + B * Cin * N + M * M + 4 * Cout * Cin
                                + 2 * Cout + Cin * M + Cout * Cin + Cout
                                + Cout * M)),
    )

    out_t = pl.pallas_call(
        functools.partial(_stconv_kernel, B=B, Cin=Cin, Cout=Cout),
        out_shape=jax.ShapeDtypeStruct((Cout, M), jnp.float32),
        in_specs=[VMEM_SPEC] * 16,
        out_specs=VMEM_SPEC,
        compiler_params=pltpu.CompilerParams(
            vmem_limit_bytes=32 * 1024 * 1024),
        cost_estimate=cost,
    )(g_in_t, wf_in_t, w_in_t, b_in_rows,
      g_out_t, wf_out_t, w_out_t, b_out_rows,
      x_lanes, a_hat_t, wg_in_t, wg_out_t, bg_col,
      x_nodes_t, wr_t, br_col)

    # (Cout, M) -> (B, N, Cout); tiny XLA transpose/reshape in the wrapper.
    return out_t.T.reshape(B, N, Cout)


# ---------------------------------------------------------------------------
# Deterministic parameter init (glorot like torch_geometric's `glorot`).
# ---------------------------------------------------------------------------
def glorot(key, shape):
    std = float(np.sqrt(6.0 / (shape[-2] + shape[-1])))
    return jax.random.uniform(key, shape, jnp.float32, -std, std)


def init_params(key, N, Cin, Cout, G):
    ks = jax.random.split(key, 9)
    return dict(
        wf_in=glorot(ks[0], (G, N, N)),
        w_in=glorot(ks[1], (N, N)),
        b_in=jax.random.uniform(ks[2], (Cin,), jnp.float32, -0.1, 0.1),
        wf_out=glorot(ks[3], (G, N, N)),
        w_out=glorot(ks[4], (N, N)),
        b_out=jax.random.uniform(ks[5], (Cin,), jnp.float32, -0.1, 0.1),
        wg=glorot(ks[6], (2 * Cin, 2 * Cout)),        # GCNConv weight, (in, out)
        bg=jax.random.uniform(ks[7], (2 * Cout,), jnp.float32, -0.1, 0.1),
        w_res=glorot(ks[8], (Cin, Cout)),             # residual Linear, (in, out)
        b_res=jax.random.uniform(jax.random.fold_in(key, 99), (Cout,),
                                 jnp.float32, -0.1, 0.1),
    )


# ---------------------------------------------------------------------------
# Pure-JAX reference (original, non-reassociated math) for the sanity check.
# ---------------------------------------------------------------------------
def reference(x, graph_in, graph_out, a_hat, p):
    def mgc(xx, graph, wf, w, b):
        g = jnp.sum(graph * wf, axis=0)
        return jnp.einsum("ij,bjc->bic", g @ w, xx) + b

    y = jax.nn.relu(jnp.concatenate(
        [mgc(x, graph_in, p["wf_in"], p["w_in"], p["b_in"]),
         mgc(x, graph_out, p["wf_out"], p["w_out"], p["b_out"])], axis=-1))
    B, N, c = y.shape
    h = a_hat @ (y.reshape(-1, c) @ p["wg"]) + p["bg"]
    Cout = p["w_res"].shape[1]
    glu = h[:, :Cout] * jax.nn.sigmoid(h[:, Cout:])
    res = jax.nn.relu(x.reshape(-1, x.shape[-1]) @ p["w_res"] + p["b_res"])
    return (glu + res).reshape(B, N, Cout)


if __name__ == "__main__":
    B, N, Cin, Cout, G = 2, 16, 4, 8, 3          # batch, stations, in/out chans, graphs
    M = B * N

    key = jax.random.PRNGKey(0)
    kx, kgi, kgo, kp = jax.random.split(key, 4)
    x = jax.random.normal(kx, (B, N, Cin), jnp.float32)
    graph_in = jax.random.uniform(kgi, (G, N, N), jnp.float32)
    graph_out = jax.random.uniform(kgo, (G, N, N), jnp.float32)

    # deterministic bidirectional ring over the B*N flattened nodes
    src = jnp.arange(M)
    dst = (src + 1) % M
    edge_index_short = jnp.stack([jnp.concatenate([src, dst]),
                                  jnp.concatenate([dst, src])]).astype(jnp.int32)

    params = init_params(kp, N, Cin, Cout, G)

    out = jax.block_until_ready(
        stconv_forward(x, graph_in, graph_out, edge_index_short, params))

    ref = reference(x, graph_in, graph_out,
                    build_gcn_adj_t(edge_index_short, M).T, params)
    # Tolerance slightly looser than the previous 1e-4: the kernel intentionally
    # reassociates the GCN matmuls ((A@x)@W instead of A@(x@W)), which changes
    # f32 accumulation order.
    np.testing.assert_allclose(np.asarray(out), np.asarray(ref),
                               rtol=1e-3, atol=1e-3)

    print("KERNEL_OK")
</pallas_src>

<mosaic_0001>
module attributes {stable_mosaic.version = 11 : i64} {
  func.func @_stconv_kernel(%arg0: memref<3x16x16xf32, #tpu.memory_space<vmem>>, %arg1: memref<3x16x16xf32, #tpu.memory_space<vmem>>, %arg2: memref<16x16xf32, #tpu.memory_space<vmem>>, %arg3: memref<8x1xf32, #tpu.memory_space<vmem>>, %arg4: memref<3x16x16xf32, #tpu.memory_space<vmem>>, %arg5: memref<3x16x16xf32, #tpu.memory_space<vmem>>, %arg6: memref<16x16xf32, #tpu.memory_space<vmem>>, %arg7: memref<8x1xf32, #tpu.memory_space<vmem>>, %arg8: memref<8x16xf32, #tpu.memory_space<vmem>>, %arg9: memref<32x32xf32, #tpu.memory_space<vmem>>, %arg10: memref<16x4xf32, #tpu.memory_space<vmem>>, %arg11: memref<16x4xf32, #tpu.memory_space<vmem>>, %arg12: memref<16x1xf32, #tpu.memory_space<vmem>>, %arg13: memref<4x32xf32, #tpu.memory_space<vmem>>, %arg14: memref<8x4xf32, #tpu.memory_space<vmem>>, %arg15: memref<8x1xf32, #tpu.memory_space<vmem>>, %arg16: memref<8x32xf32, #tpu.memory_space<vmem>>) attributes {dimension_semantics = [], scalar_prefetch = 0 : i64, scratch_operands = 0 : i64, tpu.core_type = #tpu.core_type<tc>} {
    %c0 = arith.constant 0 : index
    %c0_0 = arith.constant 0 : index
    %c0_1 = arith.constant 0 : index
    %0 = vector.load %arg0[%c0, %c0_0, %c0_1] : memref<3x16x16xf32, #tpu.memory_space<vmem>>, vector<3x16x16xf32>
    %c0_2 = arith.constant 0 : index
    %c0_3 = arith.constant 0 : index
    %c0_4 = arith.constant 0 : index
    %1 = vector.load %arg1[%c0_2, %c0_3, %c0_4] : memref<3x16x16xf32, #tpu.memory_space<vmem>>, vector<3x16x16xf32>
    %2 = arith.mulf %0, %1 : vector<3x16x16xf32>
    %cst = arith.constant dense<0.000000e+00> : vector<16x16xf32>
    %3 = vector.multi_reduction <add>, %2, %cst [0] : vector<3x16x16xf32> to vector<16x16xf32>
    %c0_5 = arith.constant 0 : index
    %c0_6 = arith.constant 0 : index
    %c0_7 = arith.constant 0 : index
    %4 = vector.load %arg4[%c0_5, %c0_6, %c0_7] : memref<3x16x16xf32, #tpu.memory_space<vmem>>, vector<3x16x16xf32>
    %c0_8 = arith.constant 0 : index
    %c0_9 = arith.constant 0 : index
    %c0_10 = arith.constant 0 : index
    %5 = vector.load %arg5[%c0_8, %c0_9, %c0_10] : memref<3x16x16xf32, #tpu.memory_space<vmem>>, vector<3x16x16xf32>
    %6 = arith.mulf %4, %5 : vector<3x16x16xf32>
    %cst_11 = arith.constant dense<0.000000e+00> : vector<16x16xf32>
    %7 = vector.multi_reduction <add>, %6, %cst_11 [0] : vector<3x16x16xf32> to vector<16x16xf32>
    %c0_12 = arith.constant 0 : index
    %c0_13 = arith.constant 0 : index
    %8 = vector.load %arg2[%c0_12, %c0_13] : memref<16x16xf32, #tpu.memory_space<vmem>>, vector<16x16xf32>
    %cst_14 = arith.constant dense<0.000000e+00> : vector<16x16xf32>
    %9 = tpu.matmul %8, %3, %cst_14 {dimension_numbers = #tpu.dot_dimension_numbers<[1], [0], [0], [1], [0, 0, 1, 1], [], []>} : vector<16x16xf32>, vector<16x16xf32>, vector<16x16xf32> -> vector<16x16xf32>
    %c0_15 = arith.constant 0 : index
    %c0_16 = arith.constant 0 : index
    %10 = vector.load %arg6[%c0_15, %c0_16] : memref<16x16xf32, #tpu.memory_space<vmem>>, vector<16x16xf32>
    %cst_17 = arith.constant dense<0.000000e+00> : vector<16x16xf32>
    %11 = tpu.matmul %10, %7, %cst_17 {dimension_numbers = #tpu.dot_dimension_numbers<[1], [0], [0], [1], [0, 0, 1, 1], [], []>} : vector<16x16xf32>, vector<16x16xf32>, vector<16x16xf32> -> vector<16x16xf32>
    %c0_18 = arith.constant 0 : index
    %c0_19 = arith.constant 0 : index
    %12 = vector.load %arg8[%c0_18, %c0_19] : memref<8x16xf32, #tpu.memory_space<vmem>>, vector<8x16xf32>
    %cst_20 = arith.constant dense<0.000000e+00> : vector<8x16xf32>
    %13 = tpu.matmul %12, %9, %cst_20 {dimension_numbers = #tpu.dot_dimension_numbers<[1], [0], [0], [1], [0, 0, 1, 1], [], []>} : vector<8x16xf32>, vector<16x16xf32>, vector<8x16xf32> -> vector<8x16xf32>
    %c0_21 = arith.constant 0 : index
    %c0_22 = arith.constant 0 : index
    %14 = vector.load %arg3[%c0_21, %c0_22] : memref<8x1xf32, #tpu.memory_space<vmem>>, vector<8x1xf32>
    %15 = vector.broadcast %14 : vector<8x1xf32> to vector<8x16xf32>
    %16 = arith.addf %13, %15 : vector<8x16xf32>
    %cst_23 = arith.constant 0.000000e+00 : f32
    %17 = vector.broadcast %cst_23 : f32 to vector<8x16xf32>
    %18 = arith.maximumf %16, %17 : vector<8x16xf32>
    %cst_24 = arith.constant dense<0.000000e+00> : vector<8x16xf32>
    %19 = tpu.matmul %12, %11, %cst_24 {dimension_numbers = #tpu.dot_dimension_numbers<[1], [0], [0], [1], [0, 0, 1, 1], [], []>} : vector<8x16xf32>, vector<16x16xf32>, vector<8x16xf32> -> vector<8x16xf32>
    %c0_25 = arith.constant 0 : index
    %c0_26 = arith.constant 0 : index
    %20 = vector.load %arg7[%c0_25, %c0_26] : memref<8x1xf32, #tpu.memory_space<vmem>>, vector<8x1xf32>
    %21 = vector.broadcast %20 : vector<8x1xf32> to vector<8x16xf32>
    %22 = arith.addf %19, %21 : vector<8x16xf32>
    %cst_27 = arith.constant 0.000000e+00 : f32
    %23 = vector.broadcast %cst_27 : f32 to vector<8x16xf32>
    %24 = arith.maximumf %22, %23 : vector<8x16xf32>
    %25 = vector.extract_strided_slice %18 {offsets = [0, 0], sizes = [4, 16], strides = [1, 1]} : vector<8x16xf32> to vector<4x16xf32>
    %26 = vector.extract_strided_slice %18 {offsets = [4, 0], sizes = [4, 16], strides = [1, 1]} : vector<8x16xf32> to vector<4x16xf32>
    %27 = tpu.concatenate %25, %26 in 1 : vector<4x16xf32>, vector<4x16xf32> -> vector<4x32xf32>
    %28 = vector.extract_strided_slice %24 {offsets = [0, 0], sizes = [4, 16], strides = [1, 1]} : vector<8x16xf32> to vector<4x16xf32>
    %29 = vector.extract_strided_slice %24 {offsets = [4, 0], sizes = [4, 16], strides = [1, 1]} : vector<8x16xf32> to vector<4x16xf32>
    %30 = tpu.concatenate %28, %29 in 1 : vector<4x16xf32>, vector<4x16xf32> -> vector<4x32xf32>
    %c0_28 = arith.constant 0 : index
    %c0_29 = arith.constant 0 : index
    %31 = vector.load %arg9[%c0_28, %c0_29] : memref<32x32xf32, #tpu.memory_space<vmem>>, vector<32x32xf32>
    %cst_30 = arith.constant dense<0.000000e+00> : vector<4x32xf32>
    %32 = tpu.matmul %27, %31, %cst_30 {dimension_numbers = #tpu.dot_dimension_numbers<[1], [0], [0], [1], [0, 0, 1, 1], [], []>} : vector<4x32xf32>, vector<32x32xf32>, vector<4x32xf32> -> vector<4x32xf32>
    %cst_31 = arith.constant dense<0.000000e+00> : vector<4x32xf32>
    %33 = tpu.matmul %30, %31, %cst_31 {dimension_numbers = #tpu.dot_dimension_numbers<[1], [0], [0], [1], [0, 0, 1, 1], [], []>} : vector<4x32xf32>, vector<32x32xf32>, vector<4x32xf32> -> vector<4x32xf32>
    %c0_32 = arith.constant 0 : index
    %c0_33 = arith.constant 0 : index
    %34 = vector.load %arg10[%c0_32, %c0_33] : memref<16x4xf32, #tpu.memory_space<vmem>>, vector<16x4xf32>
    %cst_34 = arith.constant dense<0.000000e+00> : vector<16x32xf32>
    %35 = tpu.matmul %34, %32, %cst_34 {dimension_numbers = #tpu.dot_dimension_numbers<[1], [0], [0], [1], [0, 0, 1, 1], [], []>} : vector<16x4xf32>, vector<4x32xf32>, vector<16x32xf32> -> vector<16x32xf32>
    %c0_35 = arith.constant 0 : index
    %c0_36 = arith.constant 0 : index
    %36 = vector.load %arg11[%c0_35, %c0_36] : memref<16x4xf32, #tpu.memory_space<vmem>>, vector<16x4xf32>
    %cst_37 = arith.constant dense<0.000000e+00> : vector<16x32xf32>
    %37 = tpu.matmul %36, %33, %cst_37 {dimension_numbers = #tpu.dot_dimension_numbers<[1], [0], [0], [1], [0, 0, 1, 1], [], []>} : vector<16x4xf32>, vector<4x32xf32>, vector<16x32xf32> -> vector<16x32xf32>
    %38 = arith.addf %35, %37 : vector<16x32xf32>
    %c0_38 = arith.constant 0 : index
    %c0_39 = arith.constant 0 : index
    %39 = vector.load %arg12[%c0_38, %c0_39] : memref<16x1xf32, #tpu.memory_space<vmem>>, vector<16x1xf32>
    %40 = vector.broadcast %39 : vector<16x1xf32> to vector<16x32xf32>
    %41 = arith.addf %38, %40 : vector<16x32xf32>
    %42 = vector.extract_strided_slice %41 {offsets = [0, 0], sizes = [8, 32], strides = [1, 1]} : vector<16x32xf32> to vector<8x32xf32>
    %43 = vector.extract_strided_slice %41 {offsets = [8, 0], sizes = [8, 32], strides = [1, 1]} : vector<16x32xf32> to vector<8x32xf32>
    %44 = arith.negf %43 : vector<8x32xf32>
    %45 = math.exp %44 : vector<8x32xf32>
    %cst_40 = arith.constant 1.000000e+00 : f32
    %46 = vector.broadcast %cst_40 : f32 to vector<8x32xf32>
    %47 = arith.addf %46, %45 : vector<8x32xf32>
    %48 = arith.divf %46, %47 : vector<8x32xf32>
    %49 = arith.mulf %42, %48 : vector<8x32xf32>
    %c0_41 = arith.constant 0 : index
    %c0_42 = arith.constant 0 : index
    %50 = vector.load %arg14[%c0_41, %c0_42] : memref<8x4xf32, #tpu.memory_space<vmem>>, vector<8x4xf32>
    %c0_43 = arith.constant 0 : index
    %c0_44 = arith.constant 0 : index
    %51 = vector.load %arg13[%c0_43, %c0_44] : memref<4x32xf32, #tpu.memory_space<vmem>>, vector<4x32xf32>
    %cst_45 = arith.constant dense<0.000000e+00> : vector<8x32xf32>
    %52 = tpu.matmul %50, %51, %cst_45 {dimension_numbers = #tpu.dot_dimension_numbers<[1], [0], [0], [1], [0, 0, 1, 1], [], []>} : vector<8x4xf32>, vector<4x32xf32>, vector<8x32xf32> -> vector<8x32xf32>
    %c0_46 = arith.constant 0 : index
    %c0_47 = arith.constant 0 : index
    %53 = vector.load %arg15[%c0_46, %c0_47] : memref<8x1xf32, #tpu.memory_space<vmem>>, vector<8x1xf32>
    %54 = vector.broadcast %53 : vector<8x1xf32> to vector<8x32xf32>
    %55 = arith.addf %52, %54 : vector<8x32xf32>
    %cst_48 = arith.constant 0.000000e+00 : f32
    %56 = vector.broadcast %cst_48 : f32 to vector<8x32xf32>
    %57 = arith.maximumf %55, %56 : vector<8x32xf32>
    %58 = arith.addf %49, %57 : vector<8x32xf32>
    %c0_49 = arith.constant 0 : index
    %c0_50 = arith.constant 0 : index
    %59 = vector.load %arg16[%c0_49, %c0_50] : memref<8x32xf32, #tpu.memory_space<vmem>>, vector<8x32xf32>
    tpu.vector_store %arg16[%c0_49, %c0_50], %58 {strides = array<i32>} : memref<8x32xf32, #tpu.memory_space<vmem>>, vector<8x32xf32>,
    return
  }
}

</mosaic_0001>

<bundles_post_ra>
// kernel: tpu_custom_call.1
= control target key start
LH: loop header
LB: loop body
LE: loop exit
PB: predicated region body
PF: predicated region fallthrough
CT: control target
= control target key end

     0   :  { %s1585_s0 = inlined_call_operand.vmem [shape: f32[3,16,16], index: 0, kind: input, shape index: {}]   ;;  %s1586_s1 = inlined_call_operand.vmem [shape: f32[3,16,16], index: 1, kind: input, shape index: {}]   ;;  %s1587_s2 = inlined_call_operand.hbm [shape: f32[16,16], index: 2, kind: input, shape index: {}]   ;;  %s1588_s3 = inlined_call_operand.vmem [shape: f32[8,1], index: 3, kind: input, shape index: {}]   ;;  %s1589_s4 = inlined_call_operand.hbm [shape: f32[3,16,16], index: 4, kind: input, shape index: {}]   ;;  %s1590_s5 = inlined_call_operand.hbm [shape: f32[3,16,16], index: 5, kind: input, shape index: {}]   ;;  %s1591_s6 = inlined_call_operand.hbm [shape: f32[16,16], index: 6, kind: input, shape index: {}]   ;;  %s1592_s7 = inlined_call_operand.vmem [shape: f32[8,1], index: 7, kind: input, shape index: {}]   ;;  %s1593_s8 = inlined_call_operand.hbm [shape: f32[8,16], index: 8, kind: input, shape index: {}]   ;;  %s1594_s9 = inlined_call_operand.vmem [shape: f32[32,32], index: 9, kind: input, shape index: {}]   ;;  %s1595_s10 = inlined_call_operand.vmem [shape: f32[16,4], index: 10, kind: input, shape index: {}]   ;;  %s1596_s11 = inlined_call_operand.vmem [shape: f32[16,4], index: 11, kind: input, shape index: {}]   ;;  %s1597_s12 = inlined_call_operand.vmem [shape: f32[16,1], index: 12, kind: input, shape index: {}]   ;;  %s1598_s13 = inlined_call_operand.vmem [shape: f32[4,32], index: 13, kind: input, shape index: {}]   ;;  %s1599_s14 = inlined_call_operand.vmem [shape: f32[8,4], index: 14, kind: input, shape index: {}]   ;;  %s1600_s15 = inlined_call_operand.vmem [shape: f32[8,1], index: 15, kind: input, shape index: {}]   ;;  %s1601_s16 = inlined_call_operand.hbm [shape: f32[8,32], index: 16, kind: output, shape index: {}]  }
   0x1   :  { %1603 = sst [smem:[#allocation16_spill]] %s1585_s0 }
   0x2   :  { %21 = vsyncpa [#allocation3], 0 }
   0x3   :  { %22 = vsyncpa [#allocation6], 0 }
   0x4   :  { %23 = vsyncpa [#allocation9], 0 }
   0x5   :  { %24 = vsyncpa [#allocation4], 0  ;;  %s1264_s21 = smov [#allocation5]   ;;  %s1265_s23 = smov [#allocation8]  }
   0x6   :  { %s48_s22 = sshll.u32 %s1264_s21, 4  ;;  %s72_s24 = sshll.u32 %s1265_s23, 4  ;;  %s49_s22 = int_to_ptr.vmem [resolvable:$true] %s48_s22  ;;  %s1362_s24 = int_to_ptr.vmem [resolvable:$true] %s72_s24 }
   0x7   :  { %s1124_s27 = scalar_lea.hbm %s1589_s4, 768 }
   0x8   :  { %p1125_p0 = scmp.ne.s32.totalorder %s1589_s4, %s1124_s27  ;;  %p1128_p1 = scmp.lt.u32.totalorder %s1124_s27, %s1589_s4 }
   0xa   :  { %p1130_p2 = pnand %p1128_p1, %p1125_p0 }
   0xc   :  { %1133 = shalt.err (!%p1130_p2)
}
   0xd   :  { %s1134_s17 = scalar_lea.vmem %s49_s22, 768  ;;  %p1139_p4 = scmp.lt.s32.totalorder %s49_s22, %s49_s22 }
   0xe   :  { %p1135_p3 = scmp.ne.s32.totalorder %s49_s22, %s1134_s17  ;;  %p1140_p5 = scmp.lt.s32.totalorder %s1134_s17, %s1134_s17 }
  0x10   :  { %p1141_p6 = por %p1140_p5, %p1139_p4 }
  0x12   :  { %p1142_p7 = pnand %p1141_p6, %p1135_p3 }
  0x14   :  { %1145 = shalt.err (!%p1142_p7)
}
  0x15   :  { %s1266_s18 = smov 128   ;;  %s1267_s19 = smov 8  }
  0x16   :  { %54 = dma.hbm_to_vmem [thread:$0]  %s1589_s4, 768, %s49_s22, [#allocation6], %s1266_s18, %s1266_s18, %s1267_s19  }
  0x17   :  { %s1146_s26 = scalar_lea.hbm %s1591_s6, 256 }
  0x18   :  { %p1147_p8 = scmp.ne.s32.totalorder %s1591_s6, %s1146_s26  ;;  %p1150_p9 = scmp.lt.u32.totalorder %s1146_s26, %s1591_s6 }
  0x1a   :  { %p1152_p10 = pnand %p1150_p9, %p1147_p8 }
  0x1c   :  { %1155 = shalt.err (!%p1152_p10)
}
  0x1d   :  { %s1156_s0 = scalar_lea.vmem %s1362_s24, 256  ;;  %p1161_p12 = scmp.lt.s32.totalorder %s1362_s24, %s1362_s24 }
  0x1e   :  { %p1157_p11 = scmp.ne.s32.totalorder %s1362_s24, %s1156_s0  ;;  %p1162_p13 = scmp.lt.s32.totalorder %s1156_s0, %s1156_s0 }
  0x20   :  { %p1163_p0 = por %p1162_p13, %p1161_p12 }
  0x22   :  { %p1164_p1 = pnand %p1163_p0, %p1157_p11 }
  0x24   :  { %1167 = shalt.err (!%p1164_p1)
}
  0x25   :  { %78 = dma.hbm_to_vmem [thread:$0]  %s1591_s6, 256, %s1362_s24, [#allocation9], %s1266_s18, %s1266_s18, %s1267_s19  }
  0x26   :  { %s1268_s17 = smov [#allocation2]   ;;  %s1269_s21 = smov [#allocation7]  }
  0x27   :  { %s34_s20 = sshll.u32 %s1268_s17, 4  ;;  %s60_s23 = sshll.u32 %s1269_s21, 4  ;;  %s35_s20 = int_to_ptr.vmem [resolvable:$true] %s34_s20  ;;  %s1399_s23 = int_to_ptr.vmem [resolvable:$true] %s60_s23 }
  0x28   :  { %s1168_s27 = scalar_lea.hbm %s1587_s2, 256 }
  0x29   :  { %p1169_p2 = scmp.ne.s32.totalorder %s1587_s2, %s1168_s27  ;;  %p1172_p3 = scmp.lt.u32.totalorder %s1168_s27, %s1587_s2 }
  0x2b   :  { %p1174_p4 = pnand %p1172_p3, %p1169_p2 }
  0x2d   :  { %1177 = shalt.err (!%p1174_p4)
}
  0x2e   :  { %s1178_s6 = scalar_lea.vmem %s35_s20, 256  ;;  %p1183_p6 = scmp.lt.s32.totalorder %s35_s20, %s35_s20 }
  0x2f   :  { %p1179_p5 = scmp.ne.s32.totalorder %s35_s20, %s1178_s6  ;;  %p1184_p7 = scmp.lt.s32.totalorder %s1178_s6, %s1178_s6 }
  0x31   :  { %p1185_p8 = por %p1184_p7, %p1183_p6 }
  0x33   :  { %p1186_p9 = pnand %p1185_p8, %p1179_p5 }
  0x35   :  { %1189 = shalt.err (!%p1186_p9)
}
  0x36   :  { %40 = dma.hbm_to_vmem [thread:$0]  %s1587_s2, 256, %s35_s20, [#allocation3], %s1266_s18, %s1266_s18, %s1267_s19  }
  0x37   :  { %s1190_s21 = scalar_lea.hbm %s1590_s5, 768 }
  0x38   :  { %p1191_p10 = scmp.ne.s32.totalorder %s1590_s5, %s1190_s21  ;;  %p1194_p11 = scmp.lt.u32.totalorder %s1190_s21, %s1590_s5 }
  0x3a   :  { %p1196_p12 = pnand %p1194_p11, %p1191_p10 }
  0x3c   :  { %1199 = shalt.err (!%p1196_p12)
}
  0x3d   :  { %s1200_s29 = scalar_lea.vmem %s1399_s23, 768  ;;  %p1205_p0 = scmp.lt.s32.totalorder %s1399_s23, %s1399_s23 }
  0x3e   :  { %p1201_p13 = scmp.ne.s32.totalorder %s1399_s23, %s1200_s29  ;;  %p1206_p1 = scmp.lt.s32.totalorder %s1200_s29, %s1200_s29 }
  0x40   :  { %p1207_p2 = por %p1206_p1, %p1205_p0 }
  0x42   :  { %p1208_p3 = pnand %p1207_p2, %p1201_p13 }
  0x44   :  { %1211 = shalt.err (!%p1208_p3)
}
  0x45   :  { %66 = dma.hbm_to_vmem [thread:$0]  %s1590_s5, 768, %s1399_s23, [#allocation6], %s1266_s18, %s1266_s18, %s1267_s19  }
  0x46   :  { %s1270_s30 = smov [#allocation10]   ;;  %s1212_s4 = scalar_lea.hbm %s1593_s8, 128 }
  0x47   :  { %s87_s0 = sshll.u32 %s1270_s30, 4  ;;  %p1213_p4 = scmp.ne.s32.totalorder %s1593_s8, %s1212_s4  ;;  %s88_s0 = int_to_ptr.vmem [resolvable:$true] %s87_s0 }
  0x48   :  { %p1216_p5 = scmp.lt.u32.totalorder %s1212_s4, %s1593_s8 }
  0x4a   :  { %p1218_p6 = pnand %p1216_p5, %p1213_p4 }
  0x4c   :  { %1221 = shalt.err (!%p1218_p6)
}
  0x4d   :  { %s1222_s26 = scalar_lea.vmem %s88_s0, 128  ;;  %p1227_p8 = scmp.lt.s32.totalorder %s88_s0, %s88_s0 }
  0x4e   :  { %p1223_p7 = scmp.ne.s32.totalorder %s88_s0, %s1222_s26  ;;  %p1228_p9 = scmp.lt.s32.totalorder %s1222_s26, %s1222_s26 }
  0x50   :  { %p1229_p10 = por %p1228_p9, %p1227_p8 }
  0x52   :  { %p1230_p11 = pnand %p1229_p10, %p1223_p7 }
  0x54   :  { %1233 = shalt.err (!%p1230_p11)
}
  0x55   :  { %90 = dma.hbm_to_vmem [thread:$0]  %s1593_s8, 128, %s88_s0, [#allocation9]  }
  0x56   :  { %1256 = dma.done.wait [#allocation3], 256  }
  0x57   :  { %1257 = vsyncadd [#allocation3], 4294967040 }
  0x58   :  { %1258 = dma.done.wait [#allocation6], 1536  }
  0x59   :  { %1259 = vsyncadd [#allocation6], 4294965760 }
  0x5a   :  { %1260 = dma.done.wait [#allocation9], 384  }
  0x5b   :  { %1261 = vsyncadd [#allocation9], 4294966912  ;;  %s1604_s27 = sld [smem:[#allocation16_spill]]  ;;  %v126_v6 = vld [vmem:[%s1586_s1] sm:$0xff]  ;;  %v127_v7 = vld [vmem:[%s1586_s1 + $0x8] sm:$0xff]  ;;  %vm138_vm0 = vcmask 130048  }
  0x5c   :  { %v128_v8 = vld [vmem:[%s1586_s1 + $0x10] sm:$0xff]  ;;  %v129_v9 = vld [vmem:[%s1586_s1 + $0x18] sm:$0xff]  ;;  %v130_v10 = vld [vmem:[%s1586_s1 + $0x20] sm:$0xff]  ;;  %v1271_v62 = vmov 0.0|0.0   ;;  %vm1272_vm1 = vmmov 0   ;;  %v1273_v63 = vmov 0.0  }
  0x5d   :  { %v131_v11 = vld [vmem:[%s1586_s1 + $0x28] sm:$0xff]  ;;  %v149_v18 = vld [vmem:[#allocation5] sm:$0xff]  ;;  %v150_v19 = vld [vmem:[#allocation5 + $0x8] sm:$0xff]  ;;  %vm517_vm2 = vcmask 261120   ;;  %vm675_vm3 = vcmask 1043456   ;;  %vm668_vm4 = vcmask 31744  }
  0x5e   :  { %v151_v20 = vld [vmem:[#allocation5 + $0x10] sm:$0xff]  ;;  %v152_v24 = vld [vmem:[#allocation5 + $0x18] sm:$0xff]  ;;  %v153_v25 = vld [vmem:[#allocation5 + $0x20] sm:$0xff]  ;;  %s1276_s20 = smov [#allocation11]  }
  0x5f   :  { %v154_v26 = vld [vmem:[#allocation5 + $0x28] sm:$0xff]  ;;  %v155_v31 = vld [vmem:[#allocation7] sm:$0xff]  ;;  %v156_v32 = vld [vmem:[#allocation7 + $0x8] sm:$0xff]  ;;  %s952_s30 = sshll.u32 %s1276_s20, 4  ;;  %s953_s30 = int_to_ptr.vmem [resolvable:$true] %s952_s30 }
  0x60   :  { %v157_v33 = vld [vmem:[#allocation7 + $0x10] sm:$0xff]  ;;  %v158_v35 = vld [vmem:[#allocation7 + $0x18] sm:$0xff]  ;;  %v159_v36 = vld [vmem:[#allocation7 + $0x20] sm:$0xff]  ;;  %v161_v38 = vmul.f32 %v155_v31, %v149_v18  ;;  %v162_v39 = vmul.f32 %v156_v32, %v150_v19  ;;  %p1239_p13 = scmp.lt.s32.totalorder %s953_s30, %s953_s30 }
  0x61   :  { %v120_v0 = vld [vmem:[%s1604_s27] sm:$0xff]  ;;  %v121_v1 = vld [vmem:[%s1604_s27 + $0x8] sm:$0xff]  ;;  %v122_v2 = vld [vmem:[%s1604_s27 + $0x10] sm:$0xff]  ;;  %v163_v40 = vmul.f32 %v157_v33, %v151_v20  ;;  %v164_v42 = vmul.f32 %v158_v35, %v152_v24  ;;  %v165_v43 = vmul.f32 %v159_v36, %v153_v25 }
  0x62   :  { %v123_v3 = vld [vmem:[%s1604_s27 + $0x18] sm:$0xff]  ;;  %v124_v4 = vld [vmem:[%s1604_s27 + $0x20] sm:$0xff]  ;;  %v125_v5 = vld [vmem:[%s1604_s27 + $0x28] sm:$0xff]  ;;  %v132_v12 = vmul.f32 %v126_v6, %v120_v0  ;;  %v133_v13 = vmul.f32 %v127_v7, %v121_v1  ;;  %v134_v14 = vmul.f32 %v128_v8, %v122_v2  ;;  %v167_v48 = vsel %vm138_vm0, %v161_v38, 0.0 }
  0x63   :  { %v135_v15 = vmul.f32 %v129_v9, %v123_v3  ;;  %v136_v16 = vmul.f32 %v130_v10, %v124_v4  ;;  %v137_v17 = vmul.f32 %v131_v11, %v125_v5  ;;  %v160_v37 = vld [vmem:[#allocation7 + $0x28] sm:$0xff]  ;;  %v177_v45 = vld [vmem:[#allocation2] sm:$0xff]  ;;  %v260_v46 = vld [vmem:[#allocation8] sm:$0xff]  ;;  %v168_v49 = vsel %vm138_vm0, %v163_v40, 0.0 }
  0x64   :  { %v139_v21 = vsel %vm138_vm0, %v132_v12, 0.0  ;;  %v140_v22 = vsel %vm138_vm0, %v134_v14, 0.0  ;;  %v144_v23 = vsel %vm138_vm0, %v133_v13, 0.0  ;;  %v166_v44 = vmul.f32 %v160_v37, %v154_v26  ;;  %1016 = vmatprep.mubr.msk.f32.mxu0 %vm138_vm0, %v177_v45  ;;  %1023 = vmatprep.mubr.msk.f32.mxu1 %vm138_vm0, %v260_v46  ;;  %v178_v59 = vld [vmem:[#allocation2 + $0x8] sm:$0xff]  ;;  %v261_v61 = vld [vmem:[#allocation8 + $0x8] sm:$0xff]  ;;  %v424_v0 = vld [vmem:[%s1592_s7] sm:$0xff] }
  0x65   :  { %v141_v27 = vadd.f32 %v140_v22, %v139_v21  ;;  %v142_v28 = vsel %vm138_vm0, %v136_v16, 0.0  ;;  %v145_v29 = vsel %vm138_vm0, %v135_v15, 0.0  ;;  %v147_v30 = vsel %vm138_vm0, %v137_v17, 0.0  ;;  %v344_v2 = vld [vmem:[%s1588_s3] sm:$0xff]  ;;  %v839_v3 = vld [vmem:[%s1597_s12 + $0x8] sm:$0xff]  ;;  %v515_v14 = vld [vmem:[%s1594_s9 + $0x10] sm:$0xff] }
  0x66   :  { %v146_v34 = vadd.f32 %v145_v29, %v144_v23  ;;  %v172_v50 = vsel %vm138_vm0, %v162_v39, 0.0  ;;  %v169_v51 = vadd.f32 %v168_v49, %v167_v48  ;;  %v170_v52 = vsel %vm138_vm0, %v165_v43, 0.0  ;;  %v861_v4 = vld [vmem:[%s1600_s15] sm:$0xff]  ;;  %v514_v13 = vld [vmem:[%s1594_s9 + $0x8] sm:$0xff]  ;;  %v516_v16 = vld [vmem:[%s1594_s9 + $0x18] sm:$0xff] }
  0x67   :  { %v143_v41 = vadd.f32 %v142_v28, %v141_v27  ;;  %v173_v53 = vsel %vm138_vm0, %v164_v42, 0.0  ;;  %v175_v54 = vsel %vm138_vm0, %v166_v44, 0.0  ;;  %v1274_v1 = vmov 0   ;;  %v343_v9 = vld [vmem:[#allocation10] sm:$0xff]  ;;  %v667_v39 = vld [vmem:[%s1596_s11 + $0x8] sm:$0xff] }
  0x68   :  { %v148_v47 = vadd.f32 %v147_v30, %v146_v34  ;;  %v174_v56 = vadd.f32 %v173_v53, %v172_v50  ;;  %v171_v57 = vadd.f32 %v170_v52, %v169_v51  ;;  %1118 = vset.pattern.permute.xlu0 %v1274_v1  ;;  %1119 = vset.pattern.permute.xlu1 %v1274_v1  ;;  %v513_v12 = vld [vmem:[%s1594_s9] sm:$0xff]  ;;  %s1275_s9 = smov 16   ;;  %v665_v46 = vld [vmem:[%s1595_s10 + $0x8] sm:$0xff] }
  0x69   :  { %427 = vperm.xlu0 %1118, %v424_v0   ;;  %v1092_v15 = vpack.c.bf16 %v514_v13, %v513_v12  ;;  %v1095_v17 = vpack.c.bf16 %v516_v16, %v515_v14  ;;  %v860_v31 = vld [vmem:[%s1598_s13] sm:$0xf] }
  0x6a   :  { %v1077_v55 = vpack.c.bf16 %v148_v47, %v143_v41  ;;  %v176_v58 = vadd.f32 %v175_v54, %v174_v56  ;;  %v859_v33 = vld [vmem:[%s1599_s14] sm:$0xff] }
  0x6b   :  { %v666_v36 = vld [vmem:[%s1596_s11] sm:$0xff] }
  0x6c   :  { %1078 = vmatprep.subr.bf16.mxu0 %v1077_v55  ;;  %v1081_v60 = vpack.c.bf16 %v176_v58, %v171_v57  ;;  %v838_v37 = vld [vmem:[%s1597_s12] sm:$0xff] }
  0x6d   :  { %1080 = vmatpush3.bf16.msra.mxu0 %v1077_v55  ;;  %347 = vperm.xlu0 %1118, %v344_v2   ;;  %v664_v41 = vld [vmem:[%s1595_s10] sm:$0xff]  ;;  %s1234_s10 = scalar_lea.vmem %s953_s30, 128 }
  0x6e   :  { %1082 = vmatprep.subr.bf16.mxu1 %v1081_v60  ;;  %1085 = vmatprep.subr.bf16.mxu0 %v1271_v62  ;;  %p1235_p12 = scmp.ne.s32.totalorder %s953_s30, %s1234_s10  ;;  %p1240_p0 = scmp.lt.s32.totalorder %s1234_s10, %s1234_s10 }
  0x6f   :  { %1084 = vmatpush3.bf16.msra.mxu1 %v1081_v60 }
  0x70   :  { %1017 = vmatmul.mubr.msk.f32.vlgmr.msra.gmra.mrb[0].mxu0 %vm138_vm0, %v178_v59  ;;  %1088 = vmatprep.subr.bf16.mxu1 %v1271_v62  ;;  %p1241_p1 = por %p1240_p0, %p1239_p13 }
  0x71   :  { %1030 = vmatprep.mubr.msk.f32.mxu0 %vm1272_vm1, %v1273_v63  ;;  %847 = vperm.xlu0 %1118, %v839_v3  }
  0x72   :  { %1024 = vmatmul.mubr.msk.f32.vlgmr.msra.gmra.mrb[0].mxu1 %vm138_vm0, %v261_v61  ;;  %p1242_p2 = pnand %p1241_p1, %p1235_p12 }
  0x73   :  { %1037 = vmatprep.mubr.msk.f32.mxu1 %vm1272_vm1, %v1273_v63 }
  0x75   :  { %864 = vperm.xlu0 %1118, %v861_v4  }
  0xe8   :  { %v428_v18 = vpop.permute.xlu0 %427 }
  0xec   :  { %v348_v21 = vpop.permute.xlu0 %347 }
  0xf0   :  { %v848_v47 = vpop.permute.xlu0 %847 }
  0xf4   :  { %v865_v54 = vpop.permute.xlu0 %864 }
 0x143   :  { %v1018_v5 = vpop.f32.mrb[0].mxu0 }
 0x144   :  { %v251_v6 = vpop.f32.mrb[1].mxu0 }
 0x145   :  { %v1086_v7 = vpack.c.bf16 %v1018_v5, %v251_v6  ;;  %v1025_v8 = vpop.f32.mrb[0].mxu1 }
 0x146   :  { %v334_v10 = vpop.f32.mrb[1].mxu1 }
 0x147   :  { %1087 = vmatpush3.bf16.msra.mxu0 %v1086_v7  ;;  %v1089_v11 = vpack.c.bf16 %v1025_v8, %v334_v10 }
 0x148   :  { %1091 = vmatprep.subr.bf16.mxu0 %v1271_v62 }
 0x149   :  { %1090 = vmatpush3.bf16.msra.mxu1 %v1089_v11 }
 0x14a   :  { %1031 = vmatmul.mubr.msk.f32.vlgmr.msra.gmra.mrb[2].mxu0 %vm138_vm0, %v343_v9  ;;  %1097 = vmatprep.subr.bf16.mxu1 %v1271_v62 }
 0x14b   :  { %1048 = vmatprep.mubr.msk.f32.mxu0 %vm1272_vm1, %v1273_v63  ;;  %1093 = vmatpush3.bf16.msra.mxu0 %v1092_v15 }
 0x14c   :  { %1038 = vmatmul.mubr.msk.f32.vlgmr.msra.gmra.mrb[2].mxu1 %vm138_vm0, %v343_v9  ;;  %1094 = vmatprep.subr.bf16.mxu0 %v1271_v62 }
 0x14d   :  { %1059 = vmatprep.mubr.msk.f32.mxu1 %vm1272_vm1, %v1273_v63  ;;  %1099 = vmatpush3.bf16.msra.mxu1 %v1092_v15 }
 0x14e   :  { %1100 = vmatprep.subr.bf16.mxu1 %v1271_v62 }
 0x14f   :  { %1096 = vmatpush3.bf16.msra.mxu0 %v1095_v17 }
 0x151   :  { %1102 = vmatpush3.bf16.msra.mxu1 %v1095_v17 }
 0x152   :  { %1072 = vmatprep.subr.mxu1 %v1273_v63 }
 0x21d   :  { %v419_v19 = vpop.f32.mrb[2].mxu0 }
 0x21e   :  { %v1032_v20 = vpop.f32.mrb[3].mxu0  ;;  %v420_v23 = vadd.f32 %v419_v19, %v348_v21 }
 0x21f   :  { %v496_v22 = vpop.f32.mrb[2].mxu1 }
 0x220   :  { %v497_v24 = vadd.f32 %v496_v22, %v428_v18  ;;  %v1039_v25 = vpop.f32.mrb[3].mxu1  ;;  %v423_v27 = vmax.f32 %v420_v23, 0.0 }
 0x222   :  { %v500_v26 = vmax.f32 %v497_v24, 0.0  ;;  %v502_v29 = vrot.slane %v423_v27, 4 }
 0x224   :  { %v508_v28 = vrot.slane %v500_v26, 4 }
 0x226   :  { %509 = vrot.lane.b32.xlu1 %v508_v28, %s1275_s9 }
 0x22a   :  { %503 = vrot.lane.b32.xlu1 %v502_v29, %s1275_s9 }
 0x22e   :  { %842 = vperm.xlu1 %1119, %v838_v37  }
 0x298   :  { %v510_v30 = vpop.permute.xlu1 %509 }
 0x299   :  { %v512_v32 = vsel %vm138_vm0, %v500_v26, %v510_v30 }
 0x29a   :  { %1060 = vmatmul.mubr.msk.f32.vlgmr.msra.gmra.mrb[4].mxu1 %vm517_vm2, %v512_v32 }
 0x29b   :  { %1073 = vmatpush3.msk.msra.mxu1 %vm675_vm3, %v860_v31  ;;  %1074 = vmatprep.mubr.msk.f32.mxu1 %vm1272_vm1, %v1273_v63 }
 0x29c   :  { %v504_v34 = vpop.permute.xlu1 %503 }
 0x29d   :  { %v506_v35 = vsel %vm138_vm0, %v423_v27, %v504_v34 }
 0x29e   :  { %1049 = vmatmul.mubr.msk.f32.vlgmr.msra.gmra.mrb[4].mxu0 %vm517_vm2, %v506_v35  ;;  %1075 = vmatmul.mubr.msk.f32.vlgmr.msra.gmra.mrb[6].mxu1 %vm668_vm4, %v859_v33 }
 0x29f   :  { %1064 = vmatprep.mubr.msk.f32.mxu0 %vm668_vm4, %v666_v36 }
 0x2ad   :  { %v843_v55 = vpop.permute.xlu1 %842 }
 0x36d   :  { %v660_v38 = vpop.f32.mrb[4].mxu1 }
 0x36e   :  { %v1061_v40 = vpop.f32.mrb[5].mxu1  ;;  %1062 = vmatprep.subr.msk.mxu0 %vm675_vm3, %v660_v38 }
 0x36f   :  { %1063 = vmatpush3.msk.msra.mxu0 %vm675_vm3, %v660_v38 }
 0x370   :  { %1065 = vmatmul.mubr.msk.f32.vlgmr.msra.gmra.mrb[6].mxu0 %vm668_vm4, %v667_v39 }
 0x371   :  { %v587_v42 = vpop.f32.mrb[4].mxu0  ;;  %v939_v43 = vpop.f32.mrb[6].mxu1  ;;  %1069 = vmatprep.mubr.msk.f32.mxu0 %vm668_vm4, %v664_v41 }
 0x372   :  { %v1050_v44 = vpop.f32.mrb[5].mxu0  ;;  %1067 = vmatprep.subr.msk.mxu0 %vm675_vm3, %v587_v42  ;;  %v1076_v45 = vpop.f32.mrb[7].mxu1  ;;  %v940_v56 = vadd.f32 %v939_v43, %v865_v54 }
 0x373   :  { %1068 = vmatpush3.msk.msra.mxu0 %vm675_vm3, %v587_v42 }
 0x374   :  { %v943_v59 = vmax.f32 %v940_v56, 0.0 }
 0x378   :  { %1070 = vmatmul.mubr.msk.f32.vlgmr.msra.gmra.mrb[6].mxu0 %vm668_vm4, %v665_v46 }
 0x44b   :  { %v1071_v48 = vpop.f32.mrb[6].mxu0 }
 0x44c   :  { %v851_v49 = vadd.f32 %v1071_v48, %v848_v47  ;;  %v829_v50 = vpop.f32.mrb[7].mxu0 }
 0x44d   :  { %v850_v57 = vadd.f32 %v843_v55, %v829_v50 }
 0x44e   :  { %v977_v51 = vmul.f32 -1.442695, %v851_v49 }
 0x450   :  { %1120 = vpow2.f32 %v977_v51 }
 0x45a   :  { %v1121_v52 = vpop.eup %1120 }
 0x45b   :  { %v855_v53 = vadd.f32 1.0, %v1121_v52 }
 0x45d   :  { %1122 = vrcp.f32 %v855_v53 }
 0x467   :  { %v1123_v58 = vpop.eup %1122 }
 0x468   :  { %v858_v60 = vmul.f32 %v1123_v58, %v850_v57 }
 0x46a   :  { %v944_v61 = vadd.f32 %v943_v59, %v858_v60 }
 0x46c   :  { %945 = vst.msk [vmem:[#allocation11] sm:$0xff] %vm517_vm2, %v944_v61 }
 0x46d   :  { %1245 = shalt.err (!%p1242_p2)
}
 0x46e   :  { %s1246_s6 = scalar_lea.hbm %s1601_s16, 128 }
 0x46f   :  { %p1247_p3 = scmp.ne.s32.totalorder %s1601_s16, %s1246_s6  ;;  %p1250_p4 = scmp.lt.u32.totalorder %s1246_s6, %s1601_s16 }
 0x471   :  { %p1252_p5 = pnand %p1250_p4, %p1247_p3 }
 0x473   :  { %1255 = shalt.err (!%p1252_p5)
}
 0x474   :  { %955 = dma.vmem_to_hbm [thread:$0]  %s953_s30, 128, %s1601_s16, [#allocation4]  }
 0x475   :  { %1262 = dma.done.wait [#allocation4], 128  }
 0x476   :  { %1263 = vsyncadd [#allocation4], 4294967168 }
 0x477   :  { %959 = vsyncpa [#allocation3], 1 }
 0x478   :  { %960 = vsyncpa [#allocation6], 1 }
 0x479   :  { %961 = vsyncpa [#allocation9], 1 }
 0x47a   :  { %962 = vsyncpa [#allocation4], 1 }

</bundles_post_ra>
